<compile_context>
chip_gen: v6e
topology: v6e:2x2x1
jax: 0.10.0
libtpu: 0.0.40
codegen_flags: <defaults>
</compile_context>

<pallas_src>
import jax
import jax.numpy as jnp
from jax.experimental import pallas as pl
from jax.experimental.pallas import tpu as pltpu


# ----------------------------------------------------------------------------
# Kernel: single whole-array HBM -> HBM DMA (never touches VMEM or vregs).
# ----------------------------------------------------------------------------
def _dma_passthrough_kernel(x_hbm_ref, o_hbm_ref, sem):
    cp = pltpu.make_async_copy(x_hbm_ref, o_hbm_ref, sem)
    cp.start()
    cp.wait()


def pallas_passthrough(x):
    """Materialize `x` as the output of a single Pallas call (one DMA, no VMEM)."""
    if x.size == 0:
        return x
    nbytes = x.size * x.dtype.itemsize
    return pl.pallas_call(
        _dma_passthrough_kernel,
        in_specs=[pl.BlockSpec(memory_space=pl.ANY)],
        out_specs=pl.BlockSpec(memory_space=pl.ANY),
        out_shape=jax.ShapeDtypeStruct(x.shape, x.dtype),
        scratch_shapes=[pltpu.SemaphoreType.DMA],
        cost_estimate=pl.CostEstimate(
            flops=0, transcendentals=0, bytes_accessed=2 * nbytes
        ),
    )(x)


# ----------------------------------------------------------------------------
# Module wrapper
# ----------------------------------------------------------------------------
class CustomIdentity:
    """JAX equivalent of the PyTorch CustomIdentity module.

    Default path is a true identity: it returns the selected argument with no
    data movement at all (the optimal implementation per the perf review).
    Set `materialize=True` only if an explicit op must appear in the graph;
    that path uses the single-DMA Pallas pass-through above.
    """

    def __init__(self, ret_idx=0, materialize=False):
        self.ret_idx = ret_idx
        self.materialize = materialize

    def __call__(self, *args):
        # Static Python argument selection, exactly like the reference module.
        out = args[self.ret_idx]
        if self.materialize:
            out = pallas_passthrough(out)
        return out


# ----------------------------------------------------------------------------
if __name__ == "__main__":
    key = jax.random.PRNGKey(0)
    kx, ky, kz = jax.random.split(key, 3)

    # Small shapes consistent with the module (it accepts arbitrary tensors).
    x = jax.random.normal(kx, (2, 4, 16, 16), jnp.float32)
    y = jax.random.normal(ky, (2, 8, 32), jnp.float32).astype(jnp.bfloat16)
    z = jax.random.normal(kz, (3, 5, 7), jnp.float32)  # non-(8,128)-friendly shape

    # Default (optimal) path: pure argument selection, zero data movement.
    ident0 = CustomIdentity(ret_idx=0)
    ident1 = CustomIdentity(ret_idx=1)
    out0 = jax.block_until_ready(ident0(x, y))
    out1 = jax.block_until_ready(ident1(x, y))
    assert out0.shape == x.shape and out0.dtype == x.dtype
    assert out1.shape == y.shape and out1.dtype == y.dtype
    assert bool(jnp.array_equal(out0, x))
    assert bool(jnp.array_equal(out1, y))

    # Kernel path: single whole-array DMA pass-through (no VMEM round trip,
    # no tiling constraints — handles odd shapes and sub-32-bit dtypes as-is).
    ident_mat = CustomIdentity(ret_idx=0, materialize=True)
    outk = jax.block_until_ready(ident_mat(x, y))
    assert outk.shape == x.shape and outk.dtype == x.dtype
    assert bool(jnp.array_equal(outk, x))

    outb = jax.block_until_ready(pallas_passthrough(y))  # bf16 tensor
    assert outb.dtype == jnp.bfloat16 and bool(jnp.array_equal(outb, y))

    outz = jax.block_until_ready(pallas_passthrough(z))  # odd-shaped tensor
    assert outz.shape == z.shape and bool(jnp.array_equal(outz, z))

    print("KERNEL_OK")
</pallas_src>

<mosaic_0001>
module attributes {stable_mosaic.version = 11 : i64} {
  func.func @_dma_passthrough_kernel(%arg0: memref<2x4x16x16xf32, #tpu.memory_space<any>>, %arg1: memref<2x4x16x16xf32, #tpu.memory_space<any>>, %arg2: memref<!tpu.dma_semaphore, #tpu.memory_space<semaphore_mem>>) attributes {dimension_semantics = [], scalar_prefetch = 0 : i64, scratch_operands = 1 : i64, tpu.core_type = #tpu.core_type<tc>} {
    tpu.enqueue_dma source(%arg0 : memref<2x4x16x16xf32, #tpu.memory_space<any>>) target(%arg1 : memref<2x4x16x16xf32, #tpu.memory_space<any>>) target_semaphore(%arg2 : memref<!tpu.dma_semaphore, #tpu.memory_space<semaphore_mem>>)
    tpu.wait_dma2 semaphore(%arg2 : memref<!tpu.dma_semaphore, #tpu.memory_space<semaphore_mem>>) src(%arg0 : memref<2x4x16x16xf32, #tpu.memory_space<any>>) dst(%arg1 : memref<2x4x16x16xf32, #tpu.memory_space<any>>)
    return
  }
}

</mosaic_0001>

<bundles_post_ra>
// kernel: tpu_custom_call.1
= control target key start
LH: loop header
LB: loop body
LE: loop exit
PB: predicated region body
PF: predicated region fallthrough
CT: control target
= control target key end

     0   :  { %s30_s6 = smov [#allocation2]   ;;  %s31_s7 = smov 131072   ;;  %s49_s0 = inlined_call_operand.hbm [shape: f32[2,4,16,16], index: 0, kind: input, shape index: {}]   ;;  %s50_s1 = inlined_call_operand.hbm [shape: f32[2,4,16,16], index: 1, kind: output, shape index: {}]  }
   0x1   :  { %s32_s8 = smov 0  }
   0x2   :  { %12 = dma.general %s49_s0, 2048, %s50_s1, %s30_s6, %s31_s7, [#allocation4], %s32_s8, 0  }
   0x3   :  { %28 = dma.done.wait [#allocation2], 2048 }
   0x4   :  { %29 = vsyncadd [#allocation2], 4294965248 }
   0x5   :  { %18 = vsyncmov [#allocation2] }
   0x8   :  { %s19_s13 = vpop.sfrf %18 }
   0x9   :  { %p24_p0 = scmp.ne.s32.totalorder %s19_s13, 0 }
   0xb   :  { %23 = shalt.err (%p24_p0)  }

</bundles_post_ra>
